<compile_context>
chip_gen: v7x
topology: tpu7x:2x2x1
jax: 0.10.0
libtpu: 0.0.40
codegen_flags: <defaults>
</compile_context>

<pallas_src>
import jax
import jax.numpy as jnp
from jax import lax
from jax.experimental import pallas as pl
from jax.experimental.pallas import tpu as pltpu

_LANES = 128


def _round_up(x, m):
    return -(-x // m) * m


def _sublane_multiple(dtype):
    # f32/i32 -> 8, bf16/i16 -> 16, i8/u8/bool -> 32 (packed sublane tiling).
    return max(8, 32 // jnp.dtype(dtype).itemsize)


def _pick_chunk(tr, target):
    """Largest multiple of 8 that divides tr and is <= target (>= 8)."""
    best, c = 8, 8
    while c <= min(tr, target):
        if tr % c == 0:
            best = c
        c += 8
    return best


def _make_dice_kernel(*, tr, chunk, bpspl, full_blocks, grid_t,
                      full_rows, rem_lanes, need_mask):
    """Builds the kernel with all shape/config constants baked in statically."""

    def kernel(logits_ref, labels_ref, part_ref):
        si = pl.program_id(1)
        ti = pl.program_id(2)

        @pl.when(ti == 0)
        def _init():
            part_ref[...] = jnp.zeros_like(part_ref)

        # Unclamped global row-block index (the index_map clamps for the DMA;
        # masking below uses the unclamped value so overflow blocks add 0).
        gb = si * bpspl + ti

        def chunk_contrib(r0, masked):
            x0 = logits_ref[0, 0, pl.ds(r0, chunk), :].astype(jnp.float32)
            x1 = logits_ref[0, 1, pl.ds(r0, chunk), :].astype(jnp.float32)
            t = labels_ref[0, pl.ds(r0, chunk), :].astype(jnp.float32)
            d = x1 - x0
            s = d * (2.0 * t - 1.0)               # +d if t==1 else -d
            contrib = 1.0 / (1.0 + jnp.exp(-s))   # sigmoid: exp on EUP
            if masked:
                row = lax.broadcasted_iota(jnp.int32, (chunk, _LANES), 0)
                lane = lax.broadcasted_iota(jnp.int32, (chunk, _LANES), 1)
                g_row = gb * tr + r0 + row
                valid = (g_row < full_rows) | (
                    (g_row == full_rows) & (lane < rem_lanes))
                contrib = jnp.where(valid, contrib, 0.0)
            return contrib

        def accumulate(masked):
            def body(ci, acc):
                r0 = pl.multiple_of(ci * chunk, chunk)
                c = chunk_contrib(r0, masked)
                # Sublane-tile-aligned partial sum: pure vreg adds, no XLU.
                return acc + c.reshape(chunk // 8, 8, _LANES).sum(axis=0)

            acc = lax.fori_loop(0, tr // chunk, body,
                                jnp.zeros((8, _LANES), jnp.float32),
                                unroll=True)
            part_ref[...] += acc.reshape(1, 1, 8, _LANES)

        if need_mask:
            @pl.when(gb < full_blocks)
            def _unmasked():
                accumulate(False)

            @pl.when(gb >= full_blocks)
            def _masked():
                accumulate(True)
        else:
            accumulate(False)

    return kernel


def dice_loss1(output, target, smooth=1.0, max_tile_rows=2048, chunk_rows=64):
    """output: (N, 2, D, H, W) float logits; target: (N, D, H, W) ints in {0,1}."""
    n, c, d, h, w = output.shape
    assert c == 2, "diceloss1 is defined for num_classes=2"
    m_s = d * h * w                        # voxels per sample
    m_total = n * m_s

    logits = output.reshape(n, c, m_s)
    # Keep narrow label dtypes narrow (1-byte labels -> 1 byte/voxel of HBM).
    labels = target if target.dtype.itemsize <= 4 else target.astype(jnp.int32)
    labels = labels.reshape(n, m_s)

    # Lane-align the flat voxel axis and guarantee >= 8 rows.
    m_pad = max(_round_up(m_s, _LANES), 8 * _LANES)
    if m_pad != m_s:
        # TODO(synk): this pad copies the inputs once in HBM; it only triggers
        # when D*H*W is not a multiple of 128 (pad voxels are masked in-kernel).
        logits = jnp.pad(logits, ((0, 0), (0, 0), (0, m_pad - m_s)))
        labels = jnp.pad(labels, ((0, 0), (0, m_pad - m_s)))
    t_rows = m_pad // _LANES

    # Packed dtypes need stricter sublane alignment; for tiny inputs just widen.
    if labels.dtype.itemsize < 4 and t_rows < _sublane_multiple(labels.dtype):
        labels = labels.astype(jnp.int32)
    if logits.dtype.itemsize < 4 and t_rows < _sublane_multiple(logits.dtype):
        logits = logits.astype(jnp.float32)

    logits = logits.reshape(n, c, t_rows, _LANES)
    labels = labels.reshape(n, t_rows, _LANES)

    sub = max(_sublane_multiple(logits.dtype), _sublane_multiple(labels.dtype))
    tr = max(sub, (min(max_tile_rows, t_rows) // sub) * sub)   # tr <= t_rows
    chunk = _pick_chunk(tr, chunk_rows)
    grid_t = -(-t_rows // tr)

    # Row-split so both v7x TensorCores get work even when N == 1
    # (harmless extra partial on single-TC v5e/v6e).
    num_splits = 2 if (n == 1 and grid_t >= 2) else 1
    bpspl = -(-grid_t // num_splits)

    full_blocks = m_s // (tr * _LANES)     # blocks with no padded/garbage voxels
    need_mask = (num_splits * bpspl * tr * _LANES) != m_s

    kernel = _make_dice_kernel(
        tr=tr, chunk=chunk, bpspl=bpspl, full_blocks=full_blocks, grid_t=grid_t,
        full_rows=m_s // _LANES, rem_lanes=m_s % _LANES, need_mask=need_mask)

    cost = pl.CostEstimate(
        flops=10 * m_total,
        transcendentals=m_total,
        bytes_accessed=int(logits.size) * int(logits.dtype.itemsize)
        + int(labels.size) * int(labels.dtype.itemsize)
        + n * num_splits * 8 * _LANES * 4,
    )

    partials = pl.pallas_call(
        kernel,
        out_shape=jax.ShapeDtypeStruct((n, num_splits, 8, _LANES), jnp.float32),
        grid_spec=pltpu.PrefetchScalarGridSpec(
            num_scalar_prefetch=0,
            grid=(n, num_splits, bpspl),
            in_specs=[
                pl.BlockSpec(
                    (1, c, tr, _LANES),
                    lambda ni, si, ti: (
                        ni, 0, jnp.minimum(si * bpspl + ti, grid_t - 1), 0)),
                pl.BlockSpec(
                    (1, tr, _LANES),
                    lambda ni, si, ti: (
                        ni, jnp.minimum(si * bpspl + ti, grid_t - 1), 0)),
            ],
            out_specs=pl.BlockSpec((1, 1, 8, _LANES),
                                   lambda ni, si, ti: (ni, si, 0, 0)),
        ),
        compiler_params=pltpu.CompilerParams(
            dimension_semantics=("parallel", "parallel", "arbitrary")),
        cost_estimate=cost,
    )(logits, labels)

    intersection = jnp.sum(partials)
    # For 2-class softmax + one-hot targets: sum(p) == sum(onehot) == N*D*H*W.
    denom = 2.0 * m_total + smooth
    return 1.0 - (2.0 * intersection + smooth) / denom


def _dice_loss_ref(output, target, smooth=1.0):
    # Pure-JAX reference mirroring the PyTorch module exactly.
    onehot = jax.nn.one_hot(target, 2, dtype=jnp.float32)            # (N,D,H,W,2)
    onehot = jnp.transpose(onehot, (0, 4, 1, 2, 3))                   # (N,2,D,H,W)
    p = jax.nn.softmax(output.astype(jnp.float32), axis=1)
    pf = p.reshape(-1)
    tf = onehot.reshape(-1)
    inter = jnp.sum(pf * tf)
    return 1.0 - (2.0 * inter + smooth) / (jnp.sum(pf) + jnp.sum(tf) + smooth)


if __name__ == "__main__":
    key = jax.random.PRNGKey(0)
    k1, k2, k3, k4, k5, k6 = jax.random.split(key, 6)

    # Case 1: lane-aligned volume, f32 logits, int32 labels (single-block path).
    out1 = jax.random.normal(k1, (2, 2, 4, 16, 16), dtype=jnp.float32)
    tgt1 = jax.random.randint(k2, (2, 4, 16, 16), 0, 2, dtype=jnp.int32)
    loss1 = jax.block_until_ready(dice_loss1(out1, tgt1, smooth=1.0))
    ref1 = _dice_loss_ref(out1, tgt1, smooth=1.0)
    assert jnp.allclose(loss1, ref1, atol=1e-5, rtol=1e-5), (loss1, ref1)

    # Case 2: N=1 (exercises the megacore row-split), int8 labels, multi-block
    # grid with a masked ragged tail (max_tile_rows forced small to stay tiny).
    out2 = jax.random.normal(k3, (1, 2, 8, 32, 36), dtype=jnp.float32)
    tgt2 = jax.random.randint(k4, (1, 8, 32, 36), 0, 2,
                              dtype=jnp.int32).astype(jnp.int8)
    loss2 = jax.block_until_ready(dice_loss1(out2, tgt2, max_tile_rows=32))
    ref2 = _dice_loss_ref(out2, tgt2)
    assert jnp.allclose(loss2, ref2, atol=1e-5, rtol=1e-5), (loss2, ref2)

    # Case 3: voxel count not a multiple of 128 (pad fallback + lane masking).
    out3 = jax.random.normal(k5, (2, 2, 5, 24, 24), dtype=jnp.float32)
    tgt3 = jax.random.randint(k6, (2, 5, 24, 24), 0, 2, dtype=jnp.int32)
    loss3 = jax.block_until_ready(dice_loss1(out3, tgt3))
    ref3 = _dice_loss_ref(out3, tgt3)
    assert jnp.allclose(loss3, ref3, atol=1e-5, rtol=1e-5), (loss3, ref3)

    print("KERNEL_OK")
</pallas_src>

<mosaic_0001>
module attributes {stable_mosaic.version = 11 : i64} {
  func.func @kernel(%arg0: i32, %arg1: i32, %arg2: i32, %arg3: memref<1x2x8x128xf32, #tpu.memory_space<vmem>>, %arg4: memref<1x8x128xi32, #tpu.memory_space<vmem>>, %arg5: memref<1x1x8x128xf32, #tpu.memory_space<vmem>>) attributes {dimension_semantics = [#tpu.dimension_semantics<parallel>, #tpu.dimension_semantics<parallel>, #tpu.dimension_semantics<arbitrary>], iteration_bounds = array<i64: 2, 1, 1>, scalar_prefetch = 0 : i64, scratch_operands = 0 : i64, tpu.core_type = #tpu.core_type<tc>, window_params = [{transform_indices = @transform_0, window_bounds = array<i64: 1, 2, 8, 128>}, {transform_indices = @transform_1, window_bounds = array<i64: 1, 8, 128>}, {transform_indices = @transform_2, window_bounds = array<i64: 1, 1, 8, 128>}]} {
    %c0_i32 = arith.constant 0 : i32
    %0 = arith.cmpi eq, %arg2, %c0_i32 : i32
    %1 = arith.extui %0 : i1 to i32
    %c0_i32_0 = arith.constant 0 : i32
    %2 = arith.cmpi ne, %1, %c0_i32_0 : i32
    scf.if %2 {
      %cst_22 = arith.constant 0.000000e+00 : f32
      %36 = vector.broadcast %cst_22 : f32 to vector<1x1x8x128xf32>
      %c0_23 = arith.constant 0 : index
      %c0_24 = arith.constant 0 : index
      %c0_25 = arith.constant 0 : index
      %c0_26 = arith.constant 0 : index
      %37 = vector.load %arg5[%c0_23, %c0_24, %c0_25, %c0_26] : memref<1x1x8x128xf32, #tpu.memory_space<vmem>>, vector<1x1x8x128xf32>
      tpu.vector_store %arg5[%c0_23, %c0_24, %c0_25, %c0_26], %36 {strides = array<i32>} : memref<1x1x8x128xf32, #tpu.memory_space<vmem>>, vector<1x1x8x128xf32>,
    } else {
    }
    %cst = arith.constant 0.000000e+00 : f32
    %3 = vector.broadcast %cst : f32 to vector<8x128xf32>
    %c0_i32_1 = arith.constant 0 : i32
    %c8_i32 = arith.constant 8 : i32
    %4 = arith.muli %c0_i32_1, %c8_i32 : i32
    %5 = tpu.assume_multiple %4, 8 : i32
    %c0 = arith.constant 0 : index
    %c0_2 = arith.constant 0 : index
    %6 = arith.index_cast %5 : i32 to index
    %c0_3 = arith.constant 0 : index
    %7 = vector.load %arg3[%c0, %c0_2, %6, %c0_3] : memref<1x2x8x128xf32, #tpu.memory_space<vmem>>, vector<1x1x8x128xf32>
    %8 = vector.shape_cast %7 : vector<1x1x8x128xf32> to vector<8x128xf32>
    %c0_4 = arith.constant 0 : index
    %c1 = arith.constant 1 : index
    %9 = arith.index_cast %5 : i32 to index
    %c0_5 = arith.constant 0 : index
    %10 = vector.load %arg3[%c0_4, %c1, %9, %c0_5] : memref<1x2x8x128xf32, #tpu.memory_space<vmem>>, vector<1x1x8x128xf32>
    %11 = vector.shape_cast %10 : vector<1x1x8x128xf32> to vector<8x128xf32>
    %c0_6 = arith.constant 0 : index
    %12 = arith.index_cast %5 : i32 to index
    %c0_7 = arith.constant 0 : index
    %13 = vector.load %arg4[%c0_6, %12, %c0_7] : memref<1x8x128xi32, #tpu.memory_space<vmem>>, vector<1x8x128xi32>
    %14 = vector.shape_cast %13 : vector<1x8x128xi32> to vector<8x128xi32>
    %15 = arith.sitofp %14 : vector<8x128xi32> to vector<8x128xf32>
    %16 = arith.subf %11, %8 : vector<8x128xf32>
    %cst_8 = arith.constant 2.000000e+00 : f32
    %17 = vector.broadcast %cst_8 : f32 to vector<8x128xf32>
    %18 = arith.mulf %17, %15 : vector<8x128xf32>
    %cst_9 = arith.constant 1.000000e+00 : f32
    %19 = vector.broadcast %cst_9 : f32 to vector<8x128xf32>
    %20 = arith.subf %18, %19 : vector<8x128xf32>
    %21 = arith.mulf %16, %20 : vector<8x128xf32>
    %cst_10 = arith.constant 0.000000e+00 : f32
    %22 = vector.broadcast %cst_10 : f32 to vector<8x128xf32>
    %23 = arith.subf %22, %21 : vector<8x128xf32>
    %24 = math.exp %23 : vector<8x128xf32>
    %cst_11 = arith.constant 1.000000e+00 : f32
    %25 = vector.broadcast %cst_11 : f32 to vector<8x128xf32>
    %26 = arith.addf %25, %24 : vector<8x128xf32>
    %cst_12 = arith.constant 1.000000e+00 : f32
    %27 = vector.broadcast %cst_12 : f32 to vector<8x128xf32>
    %28 = arith.divf %27, %26 : vector<8x128xf32>
    %29 = vector.shape_cast %28 : vector<8x128xf32> to vector<1x8x128xf32>
    %cst_13 = arith.constant dense<0.000000e+00> : vector<8x128xf32>
    %30 = vector.multi_reduction <add>, %29, %cst_13 [0] : vector<1x8x128xf32> to vector<8x128xf32>
    %31 = arith.addf %3, %30 : vector<8x128xf32>
    %c1_i32 = arith.constant 1 : i32
    %c0_14 = arith.constant 0 : index
    %c0_15 = arith.constant 0 : index
    %c0_16 = arith.constant 0 : index
    %c0_17 = arith.constant 0 : index
    %32 = vector.load %arg5[%c0_14, %c0_15, %c0_16, %c0_17] : memref<1x1x8x128xf32, #tpu.memory_space<vmem>>, vector<1x1x8x128xf32>
    %33 = vector.shape_cast %31 : vector<8x128xf32> to vector<1x1x8x128xf32>
    %34 = arith.addf %32, %33 : vector<1x1x8x128xf32>
    %c0_18 = arith.constant 0 : index
    %c0_19 = arith.constant 0 : index
    %c0_20 = arith.constant 0 : index
    %c0_21 = arith.constant 0 : index
    %35 = vector.load %arg5[%c0_18, %c0_19, %c0_20, %c0_21] : memref<1x1x8x128xf32, #tpu.memory_space<vmem>>, vector<1x1x8x128xf32>
    tpu.vector_store %arg5[%c0_18, %c0_19, %c0_20, %c0_21], %34 {strides = array<i32>} : memref<1x1x8x128xf32, #tpu.memory_space<vmem>>, vector<1x1x8x128xf32>,
    return
  }
  func.func @transform_0(%arg0: i32, %arg1: i32, %arg2: i32) -> (i32, i32, i32, i32) {
    %c1_i32 = arith.constant 1 : i32
    %0 = arith.muli %arg1, %c1_i32 : i32
    %1 = arith.addi %0, %arg2 : i32
    %c0_i32 = arith.constant 0 : i32
    %2 = arith.minsi %1, %c0_i32 : i32
    %c0_i32_0 = arith.constant 0 : i32
    %c0_i32_1 = arith.constant 0 : i32
    %c0_i32_2 = arith.constant 0 : i32
    return %arg0, %c0_i32_0, %2, %c0_i32_1 : i32, i32, i32, i32
  }
  func.func @transform_1(%arg0: i32, %arg1: i32, %arg2: i32) -> (i32, i32, i32) {
    %c1_i32 = arith.constant 1 : i32
    %0 = arith.muli %arg1, %c1_i32 : i32
    %1 = arith.addi %0, %arg2 : i32
    %c0_i32 = arith.constant 0 : i32
    %2 = arith.minsi %1, %c0_i32 : i32
    %c0_i32_0 = arith.constant 0 : i32
    %c0_i32_1 = arith.constant 0 : i32
    return %arg0, %2, %c0_i32_0 : i32, i32, i32
  }
  func.func @transform_2(%arg0: i32, %arg1: i32, %arg2: i32) -> (i32, i32, i32, i32) {
    %c0_i32 = arith.constant 0 : i32
    %c0_i32_0 = arith.constant 0 : i32
    %c0_i32_1 = arith.constant 0 : i32
    return %arg0, %arg1, %c0_i32, %c0_i32_0 : i32, i32, i32, i32
  }
}

</mosaic_0001>

<bundles_post_ra>
// kernel: tpu_custom_call.1
= control target key start
LH: loop header
LB: loop body
LE: loop exit
PB: predicated region body
PF: predicated region fallthrough
CT: control target
= control target key end

     0   :  { %7 = vsyncpa [#allocation3], 0  ;;  %s877_s0 = inlined_call_operand.hbm [shape: f32[2,2,8,128], index: 0, kind: input, shape index: {}]   ;;  %s878_s1 = inlined_call_operand.hbm [shape: s32[2,8,128], index: 1, kind: input, shape index: {}]   ;;  %s879_s2 = inlined_call_operand.hbm [shape: f32[2,1,8,128], index: 2, kind: output, shape index: {}]  }
   0x1   :  { %9 = vsyncpa [#allocation3 + $0x1], 0 }
   0x2   :  { %10 = vsyncpa [#allocation6], 0 }
   0x3   :  { %12 = vsyncpa [#allocation6 + $0x1], 0 }
   0x4   :  { %13 = vsyncpa [#allocation4], 0 }
   0x5   :  { %15 = vsyncpa [#allocation4 + $0x1], 0  ;;  %s662_s9 = smov 0   ;;  %s664_s10 = smov 0  }
   0x6   :  { %s666_s11 = smov 0   ;;  %s668_s12 = smov 0  }
   0x7   :  { %s670_s13 = smov 0   ;;  %s672_s14 = smov 0  }
   0x8 LB: > { %s400_s15 = sadd.s32 4294967295, %s640_s14   ;;  %s401_s16 = sadd.s32 4294967294, %s640_s14   ;;  %s640_s14 = sphi %s672_s14, %s21_s14   ;;  %s636_s13 = sphi %s670_s13, %s898_s13   ;;  %s632_s12 = sphi %s668_s12, %s897_s12   ;;  %s628_s11 = sphi %s666_s11, %s896_s11   ;;  %s624_s10 = sphi %s664_s10, %s895_s10   ;;  %s620_s9 = sphi %s662_s9, %s894_s9  }
   0x9   : > { %s40_s17 = sadd.s32 1, %s636_s13  ;;  %s55_s18 = sadd.s32 1, %s628_s11 }
   0xa   : > { %p42_p0 = scmp.ge.s32.totalorder %s40_s17, 2  ;;  %p62_p1 = scmp.ne.s32.totalorder %s628_s11, %s624_s10 }
   0xb   : > { %p63_p2 = scmp.eq.s32.totalorder %s640_s14, 0  ;;  %p68_p3 = scmp.ne.s32.totalorder %s624_s10, %s620_s9 }
   0xc   : > { %s900_s17 = smov (%p42_p0, %s40_s17), 0  ;;  %p69_p5 = scmp.eq.s32.totalorder %s400_s15, 0 }
   0xd   : > { %p703_p4 = por %p63_p2, %p62_p1  ;;  %s50_s20 = ssub.s32 %s636_s13, %s900_s17 }
   0xe   : > { %p128_p6 = scmp.eq.s32.totalorder %s400_s15, 1  ;;  %p53_p7 = scmp.eq.s32.totalorder %s50_s20, 0 }
   0xf   : > { %p709_p8 = por %p69_p5, %p68_p3  ;;  %p134_p10 = scmp.eq.s32.totalorder %s401_s16, 1 }
  0x10   : > { %p713_p9 = por %p128_p6, %p62_p1  ;;  %p437_p13 = scmp.lt.s32.totalorder %s640_s14, 2 }
  0x11   : > { %s883_s21 = scalar_select %p709_p8, 1, 0 }
  0x12   : > { %s884_s22 = scalar_select %p713_p9, 1, 0 }
  0x13   : > { %s718_s23 = scalar_select %p53_p7, %s628_s11, %s55_s18  }
  0x14   : > { %p720_p11 = por %p134_p10, %p68_p3  ;;  %s727_s25 = sand.u32 1, %s628_s11  }
  0x15   : > { %s404_s26 = sshll.u32 %s727_s25, 4  ;;  %s419_s27 = sshll.u32 %s636_s13, 8 }
  0x16   : > { %s885_s24 = scalar_select %p720_p11, 1, 0 }
  0x17   : > { %s734_s30 = scalar_lea.hbm %s877_s0, %s419_s27  ;;  %s158_s3 = scalar_lea.vmem [#allocation2], %s404_s26 }
  0x18   : > { %s169_s4 = sshll.u32 %s158_s3, 4  ;;  %p740_p0 = pnand %p437_p13, %p703_p4  ;;  %s736_s4 = int_to_ptr.vmem [resolvable:$true] %s169_s4 }
  0x19   : > { %s155_s6 = scalar_lea.sflag [#allocation3], %s727_s25  ;;  %s494_s7 = scalar_lea.hbm %s734_s30, 256 }
  0x1a   : > { %p495_p2 = scmp.ne.s32.totalorder %s734_s30, %s494_s7  ;;  %p496_p3 = pneg %p740_p0 }
  0x1b   : > { %s499_s16 = scalar_lea.hbm %s877_s0, 512  ;;  %p500_p4 = scmp.lt.u32.totalorder %s734_s30, %s877_s0 }
  0x1c   : > { %p497_p5 = pnand %p496_p3, %p495_p2  ;;  %p501_p7 = scmp.lt.u32.totalorder %s499_s16, %s494_s7 }
  0x1d   : > { %p503_p13 = scmp.lt.u32.totalorder %s494_s7, %s734_s30 }
  0x1e   : > { %p498_p6 = pneg %p497_p5  ;;  %p502_p10 = por %p501_p7, %p500_p4 }
  0x20   : > { %p504_p12 = por %p503_p13, %p502_p10 }
  0x22   : > { %p505_p1 = pnand %p504_p12, %p498_p6 }
  0x24   : > { %508 = shalt.err (!%p505_p1)
}
  0x25   : > { %s509_s20 = scalar_lea.vmem %s736_s4, 256  ;;  %s642_s26 = smov [#allocation2]  }
  0x26   : > { %p510_p2 = scmp.ne.s32.totalorder %s736_s4, %s509_s20  ;;  %s514_s27 = sshll.u32 %s642_s26, 4  ;;  %s515_s27 = int_to_ptr.vmem [resolvable:$false] %s514_s27 }
  0x27   : > { %s516_s28 = scalar_lea.vmem %s515_s27, 512  ;;  %p517_p9 = scmp.lt.s32.totalorder %s736_s4, %s515_s27 }
  0x28   : > { %p512_p5 = pnand %p510_p2, %p496_p3  ;;  %p518_p4 = scmp.lt.s32.totalorder %s516_s28, %s509_s20 }
  0x2a   : > { %p513_p11 = pneg %p512_p5  ;;  %p519_p7 = por %p518_p4, %p517_p9 }
  0x2c   : > { %p520_p10 = pnand %p519_p7, %p513_p11 }
  0x2e   : > { %523 = shalt.err (!%p520_p10)
}
  0x2f   : > { %s643_s29 = smov 128   ;;  %s644_s3 = smov 8  }
  0x30   : > { %429 = dma.hbm_to_vmem [thread:$0]  (!%p740_p0), %s734_s30, 256, %s736_s4, %s155_s6, %s643_s29, %s643_s29, %s644_s3  }
  0x31   : > { %p199_p12 = scmp.lt.s32.totalorder %s640_s14, 3  ;;  %s407_s7 = sshll.u32 %s727_s25, 3 }
  0x32   : > { %s408_s8 = sshll.u32 %s636_s13, 7  ;;  %p887_p9 = scmp.ge.s32.totalorder %s640_s14, 1 }
  0x33   : > { %s785_s19 = scalar_lea.hbm %s878_s1, %s408_s8  ;;  %s183_s20 = scalar_lea.vmem [#allocation5], %s407_s7 }
  0x34   : > { %p778_p11 = pnand %p887_p9, %p199_p12  ;;  %s194_s26 = sshll.u32 %s183_s20, 4  ;;  %s195_s26 = int_to_ptr.vmem [resolvable:$true] %s194_s26 }
  0x35   : > { %s180_s30 = scalar_lea.sflag [#allocation6], %s727_s25  ;;  %s524_s4 = scalar_lea.hbm %s785_s19, 128 }
  0x36   : > { %s888_s15 = scalar_select %p778_p11, 1, 0 }
  0x37   : > { %p525_p1 = scmp.ne.s32.totalorder %s785_s19, %s524_s4  ;;  %s529_s28 = scalar_lea.hbm %s878_s1, 256 }
  0x38   : > { %p530_p2 = scmp.lt.u32.totalorder %s785_s19, %s878_s1  ;;  %p531_p5 = scmp.lt.u32.totalorder %s529_s28, %s524_s4 }
  0x39   : > { %p527_p6 = pnand %p525_p1, %p496_p3  ;;  %p533_p7 = scmp.lt.u32.totalorder %s524_s4, %s785_s19 }
  0x3a   : > { %p532_p4 = por %p531_p5, %p530_p2 }
  0x3b   : > { %p528_p13 = pneg %p527_p6 }
  0x3c   : > { %p534_p10 = por %p533_p7, %p532_p4 }
  0x3e   : > { %p535_p12 = pnand %p534_p10, %p528_p13 }
  0x40   : > { %538 = shalt.err (!%p535_p12)
}
  0x41   : > { %s539_s25 = scalar_lea.vmem %s195_s26, 128  ;;  %s645_s7 = smov [#allocation5]  }
  0x42   : > { %p540_p9 = scmp.ne.s32.totalorder %s195_s26, %s539_s25  ;;  %s544_s8 = sshll.u32 %s645_s7, 4  ;;  %s545_s8 = int_to_ptr.vmem [resolvable:$false] %s544_s8 }
  0x43   : > { %s546_s16 = scalar_lea.vmem %s545_s8, 256  ;;  %p547_p8 = scmp.lt.s32.totalorder %s195_s26, %s545_s8 }
  0x44   : > { %p542_p1 = pnand %p540_p9, %p496_p3  ;;  %p548_p11 = scmp.lt.s32.totalorder %s546_s16, %s539_s25 }
  0x46   : > { %p543_p6 = pneg %p542_p1  ;;  %p549_p2 = por %p548_p11, %p547_p8 }
  0x48   : > { %p550_p5 = pnand %p549_p2, %p543_p6 }
  0x4a   : > { %553 = shalt.err (!%p550_p5)
}
  0x4b   : > { %432 = dma.hbm_to_vmem [thread:$0]  (!%p740_p0), %s785_s19, 128, %s195_s26, %s180_s30  }
  0x4c   : > { %p889_p13 = scmp.ne.s32.totalorder %s888_s15, 0 }
  0x4d   : > { %s810_s18 = sand.u32 (!%p889_p13), 1, %s624_s10   ;;  %p890_p3 = scmp.ne.s32.totalorder (!%p889_p13), %s883_s21, 0 }
  0x4e   : > { %203 = sbr.rel (%p889_p13) target bundleno = 141 (0x8d), region = 28  ;;  %s410_s20 = sshll.u32 (!%p889_p13), %s810_s18, 4 }
  0x4f   : > { %s206_s4 = scalar_lea.sflag (!%p889_p13), [#allocation3], %s810_s18  ;;  %s209_s6 = scalar_lea.vmem (!%p889_p13), [#allocation2], %s410_s20 }
  0x55   : > { %607 = dma.done.wait (%p890_p3), %s206_s4, 256  }
  0x56   : > { %609 = vsyncadd (%p890_p3), %s206_s4, 4294967040  ;;  %s411_s5 = sshll.u32 %s810_s18, 3  ;;  %s215_s15 = scalar_lea.sflag [#allocation6], %s810_s18 }
  0x57   : > { %s218_s19 = scalar_lea.vmem [#allocation5], %s411_s5 }
  0x58   : > { %611 = dma.done.wait (%p890_p3), %s215_s15, 128  }
  0x59   : > { %613 = vsyncadd (%p890_p3), %s215_s15, 4294967168  ;;  %v255_v0 = vld [vmem:[%s209_s6] sm:$0xff]  ;;  %v413_v1 = vld [vmem:[%s209_s6 + $0x8] sm:$0xff]  ;;  %s416_s26 = sshll.u32 %s632_s12, 7  ;;  %s243_s21 = scalar_lea.vmem [#allocation7], %s411_s5 }
  0x5a   : > { %v259_v2 = vld [vmem:[%s218_s19] sm:$0xff]  ;;  %v261_v4 = vsub.f32 %v413_v1, %v255_v0  ;;  %s291_s30 = sshll.u32 %s243_s21, 4  ;;  %s828_s29 = scalar_lea.hbm %s879_s2, %s416_s26  ;;  %s830_s30 = int_to_ptr.vmem [resolvable:$true] %s291_s30 }
  0x5b   : > { %v260_v3 = vcvt.s32.f32 %v259_v2  ;;  %s277_s3 = scalar_lea.sflag [#allocation4], %s810_s18  ;;  %s554_s25 = scalar_lea.vmem %s830_s30, 128 }
  0x5c   : > { %p555_p8 = scmp.ne.s32.totalorder %s830_s30, %s554_s25  ;;  %p891_p0 = scmp.ne.s32.totalorder %s884_s22, 0 }
  0x5d   : > { %v262_v5 = vmul.f32 2.0, %v260_v3  ;;  %s646_s12 = smov [#allocation7]  }
  0x5e   : > { %p556_p11 = pnand %p555_p8, %p891_p0  ;;  %s558_s7 = sshll.u32 %s646_s12, 4  ;;  %s559_s7 = int_to_ptr.vmem [resolvable:$false] %s558_s7 }
  0x5f   : > { %v414_v6 = vadd.f32 -1.0, %v262_v5  ;;  %s560_s8 = scalar_lea.vmem %s559_s7, 256  ;;  %p561_p7 = scmp.lt.s32.totalorder %s830_s30, %s559_s7 }
  0x60   : > { %p557_p4 = pneg %p556_p11  ;;  %p562_p10 = scmp.lt.s32.totalorder %s560_s8, %s554_s25 }
  0x61   : > { %v264_v7 = vmul.f32 %v414_v6, %v261_v4 }
  0x62   : > { %p563_p12 = por %p562_p10, %p561_p7 }
  0x63   : > { %v265_v8 = vsub.f32 0.0, %v264_v7 }
  0x64   : > { %p564_p9 = pnand %p563_p12, %p557_p4 }
  0x65   : > { %v266_v9 = vmul.f32 1.442695, %v265_v8 }
  0x67   : > { %490 = vpow2.f32 %v266_v9 }
  0x71   : > { %v491_v10 = vpop.eup %490 }
  0x72   : > { %v268_v11 = vadd.f32 1.0, %v491_v10 }
  0x74   : > { %492 = vrcp.f32 %v268_v11 }
  0x7e   : > { %v493_v12 = vpop.eup %492 }
  0x7f   : > { %275 = vst [vmem:[%s243_s21] sm:$0xff] %v493_v12 }
  0x80   : > { %567 = shalt.err (!%p564_p9)
}
  0x81   : > { %s568_s16 = scalar_lea.hbm %s828_s29, 128  ;;  %s572_s4 = scalar_lea.hbm %s879_s2, 256 }
  0x82   : > { %p569_p1 = scmp.ne.s32.totalorder %s828_s29, %s568_s16  ;;  %p573_p5 = scmp.lt.u32.totalorder %s828_s29, %s879_s2 }
  0x83   : > { %p574_p13 = scmp.lt.u32.totalorder %s572_s4, %s568_s16  ;;  %p576_p8 = scmp.lt.u32.totalorder %s568_s16, %s828_s29 }
  0x84   : > { %p570_p6 = pnand %p569_p1, %p891_p0 }
  0x85   : > { %p575_p3 = por %p574_p13, %p573_p5 }
  0x86   : > { %p571_p2 = pneg %p570_p6 }
  0x87   : > { %p577_p11 = por %p576_p8, %p575_p3 }
  0x89   : > { %p578_p4 = pnand %p577_p11, %p571_p2 }
  0x8b   : > { %581 = shalt.err (!%p578_p4)
}
  0x8c   : > { %424 = dma.vmem_to_hbm [thread:$0]  (%p891_p0), %s830_s30, 128, %s828_s29, %s277_s3  }
  0x8d PF: > { %s303_s15 = sand.u32 1, %s620_s9   ;;  %p892_p7 = scmp.ne.s32.totalorder %s885_s24, 0 }
  0x8e   : > { %p893_p10 = scmp.ge.s32.totalorder %s640_s14, 2  ;;  %s304_s19 = scalar_lea.sflag [#allocation4], %s303_s15 }
  0x90   : > { %p434_p12 = pnand %p893_p10, %p892_p7 }
  0x92   : > { %615 = dma.done.wait (!%p434_p12), %s304_s19, 128  }
  0x93   : > { %617 = vsyncadd (!%p434_p12), %s304_s19, 4294967168  ;;  %s21_s14 = sadd.s32 1, %s640_s14   ;;  %s894_s9 = smov %s624_s10 }
  0x94   : > { %p18_p9 = scmp.ge.s32.totalorder %s21_s14, 4   ;;  %s895_s10 = smov %s628_s11 }
  0x95   : > { %s896_s11 = smov %s718_s23  ;;  %s897_s12 = smov %s636_s13 }
  0x96   : > { %s898_s13 = smov %s900_s17  ;;  %20 = sbr.rel (!%p18_p9) target bundleno = 8 (0x8), region = 91 }
  0x9d   :  { %309 = vsyncpa [#allocation3], 1 }
  0x9e   :  { %311 = vsyncpa [#allocation3 + $0x1], 1 }
  0x9f   :  { %312 = vsyncpa [#allocation6], 1 }
  0xa0   :  { %314 = vsyncpa [#allocation6 + $0x1], 1 }
  0xa1   :  { %315 = vsyncpa [#allocation4], 1 }
  0xa2   :  { %317 = vsyncpa [#allocation4 + $0x1], 1 }

</bundles_post_ra>
